<compile_context>
chip_gen: v7x
topology: tpu7x:2x2x1
jax: 0.10.0
libtpu: 0.0.40
codegen_flags: <defaults>
</compile_context>

<pallas_src>
import functools

import jax
import jax.numpy as jnp
from jax import lax
from jax.experimental import pallas as pl
from jax.experimental.pallas import tpu as pltpu


def _round_up(x, m):
    return ((x + m - 1) // m) * m


# ---------------------------------------------------------------------------
# Kernel A: im2col-free conv (dense columns over padded width) + one-pass BN stats
# ---------------------------------------------------------------------------
def _conv_stats_kernel(x_ref, w_ref, mask_ref, y_ref, sum_ref, ssq_ref, *,
                       tap_shifts, tile_m):
    # x_ref   : (1, 1, Cin, TILE_IN)  bf16  input window (TILE_M + halo columns)
    # w_ref   : (KK, Cout, Cin)       bf16  per-tap weights
    # mask_ref: (1, TILE_M)           f32   1.0 on valid (non-garbage, on-stride) cols
    # y_ref   : (1, Cout, TILE_M)     f32   dense conv columns (lane-dense)
    # sum_ref : (1, Cout, 1)          f32   per-image channel sum (resident across M)
    # ssq_ref : (1, Cout, 1)          f32   per-image channel sum of squares
    t = pl.program_id(1)

    @pl.when(t == 0)
    def _init():
        sum_ref[...] = jnp.zeros_like(sum_ref)
        ssq_ref[...] = jnp.zeros_like(ssq_ref)

    x = x_ref[0, 0]                                            # (Cin, TILE_IN) bf16
    s0 = tap_shifts[0]
    acc = jnp.dot(w_ref[0], x[:, s0:s0 + tile_m],
                  preferred_element_type=jnp.float32)          # (Cout, TILE_M) f32
    for i, s in enumerate(tap_shifts[1:], start=1):            # static unroll, 8 more taps
        acc = acc + jnp.dot(w_ref[i], x[:, s:s + tile_m],
                            preferred_element_type=jnp.float32)
    y_ref[0] = acc

    msk = mask_ref[...]                                        # (1, TILE_M)
    accm = acc * msk
    sum_ref[0] += jnp.sum(accm, axis=1, keepdims=True)         # (Cout, 1)
    ssq_ref[0] += jnp.sum(accm * acc, axis=1, keepdims=True)


# ---------------------------------------------------------------------------
# Kernel B: BN apply (precomputed per-row scale/shift) + ReLU, in place, lane-dense
# ---------------------------------------------------------------------------
def _bn_relu_kernel(y_ref, scale_ref, shift_ref, o_ref):
    # y_ref/o_ref : (N*Cout, TILE_M) f32 ; scale_ref/shift_ref : (N*Cout, 1) f32
    o_ref[...] = jnp.maximum(y_ref[...] * scale_ref[...] + shift_ref[...], 0.0)


# ---------------------------------------------------------------------------
# Wrapper: reflection pad, window prep, pallas_calls, stats finish, NCHW output
# ---------------------------------------------------------------------------
def enc_conv_block(x_nchw, w_hwio, bias, gamma, beta, *, kernel_size, stride,
                   dilation, eps=1e-5):
    """x_nchw: (N, Cin, H, W). w_hwio: (KH, KW, Cin, Cout). Returns NCHW float32."""
    n, cin, h, w = x_nchw.shape
    _, _, _, cout = w_hwio.shape
    k_eff = dilation * (kernel_size - 1) + 1
    pad = (kernel_size + (kernel_size - 1) * (dilation - 1) - 1) // 2

    # --- glue: ReflectionPad2d ------------------------------------------------
    xp = jnp.pad(x_nchw, ((0, 0), (0, 0), (pad, pad), (pad, pad)), mode="reflect")
    hp, wp = h + 2 * pad, w + 2 * pad
    h_out = (hp - k_eff) // stride + 1
    w_out = (wp - k_eff) // stride + 1
    hd = hp - k_eff + 1                  # dense (stride-1) output rows
    m_dense = hd * wp                    # dense output columns (incl. garbage cols)

    lane = 128
    # M tile: 128-multiple, capped at 2048 (v7x 64 MiB VMEM discipline); tiny inputs
    # are still split into several tiles so the pipeline has >1 step per image.
    tile_m = min(2048, _round_up(m_dense, lane))
    if m_dense <= 1024:
        tile_m = lane
    m_pad = _round_up(m_dense, tile_m)
    n_tiles = m_pad // tile_m

    # --- glue: tap shifts (flat column offsets) and overlapping input windows ---
    tap_shifts = tuple((kh * dilation) * wp + kw * dilation
                       for kh in range(kernel_size) for kw in range(kernel_size))
    kk = kernel_size * kernel_size
    max_shift = tap_shifts[-1]
    tile_in = _round_up(tile_m + max_shift, lane)
    flat_len = (n_tiles - 1) * tile_m + tile_in

    x_flat = xp.reshape(n, cin, hp * wp).astype(jnp.bfloat16)       # ~1x input, bf16
    x_flat = jnp.pad(x_flat, ((0, 0), (0, 0), (0, flat_len - hp * wp)))
    col_idx = (jnp.arange(n_tiles) * tile_m)[:, None] + jnp.arange(tile_in)[None, :]
    # Overlapping per-tile windows (only halo columns are duplicated).
    x_win = jnp.transpose(x_flat[:, :, col_idx], (0, 2, 1, 3))      # (N, T, Cin, TILE_IN)

    # Per-tap weights (KK, Cout, Cin), matching the (kh, kw) tap order; bf16 operands.
    w_taps = jnp.transpose(w_hwio, (0, 1, 3, 2)).reshape(kk, cout, cin)
    w_taps = w_taps.astype(jnp.bfloat16)

    # Validity mask over dense columns: on-stride, non-garbage, non-padding.
    col = jnp.arange(m_pad)
    ho_d, wo_d = col // wp, col % wp
    valid = ((col < m_dense)
             & (ho_d % stride == 0) & (ho_d // stride < h_out)
             & (wo_d % stride == 0) & (wo_d // stride < w_out))
    mask = valid.astype(jnp.float32).reshape(1, m_pad)

    cparams = pltpu.CompilerParams(
        dimension_semantics=("parallel", "arbitrary"),
        vmem_limit_bytes=32 * 1024 * 1024)
    flops = 2 * n * m_pad * kk * cin * cout
    bytes_accessed = (2 * x_win.size + 2 * w_taps.size + 4 * mask.size
                      + 4 * n * cout * (m_pad + 2))

    # --- kernel A: conv over dense columns + one-pass per-channel statistics -----
    conv_y, ch_sum_b, ch_ssq_b = pl.pallas_call(
        functools.partial(_conv_stats_kernel, tap_shifts=tap_shifts, tile_m=tile_m),
        out_shape=(jax.ShapeDtypeStruct((n, cout, m_pad), jnp.float32),
                   jax.ShapeDtypeStruct((n, cout, 1), jnp.float32),
                   jax.ShapeDtypeStruct((n, cout, 1), jnp.float32)),
        grid_spec=pltpu.PrefetchScalarGridSpec(
            num_scalar_prefetch=0, grid=(n, n_tiles),
            in_specs=[pl.BlockSpec((1, 1, cin, tile_in), lambda b, t: (b, t, 0, 0)),
                      pl.BlockSpec((kk, cout, cin), lambda b, t: (0, 0, 0)),
                      pl.BlockSpec((1, tile_m), lambda b, t: (0, t))],
            out_specs=[pl.BlockSpec((1, cout, tile_m), lambda b, t: (b, 0, t)),
                       pl.BlockSpec((1, cout, 1), lambda b, t: (b, 0, 0)),
                       pl.BlockSpec((1, cout, 1), lambda b, t: (b, 0, 0))]),
        compiler_params=cparams,
        cost_estimate=pl.CostEstimate(flops=flops, transcendentals=0,
                                      bytes_accessed=bytes_accessed),
    )(x_win, w_taps, mask)

    # --- glue: finish statistics on Cout scalars; conv bias cancelled by BN ------
    del bias   # per-channel constant before train-mode BN is removed by mean subtraction
    m_total = n * h_out * w_out
    ch_sum = jnp.sum(ch_sum_b[:, :, 0], axis=0)                     # (Cout,)
    ch_ssq = jnp.sum(ch_ssq_b[:, :, 0], axis=0)                     # (Cout,)
    mean = ch_sum / m_total
    var = jnp.maximum(ch_ssq / m_total - mean * mean, 0.0)          # biased batch var
    scale = (gamma * lax.rsqrt(var + eps)).astype(jnp.float32)
    shift = (beta - mean * scale).astype(jnp.float32)
    rows = n * cout
    scale2d = jnp.tile(scale, n).reshape(rows, 1)
    shift2d = jnp.tile(shift, n).reshape(rows, 1)

    # --- kernel B: in-place normalize + ReLU on a lane-dense (N*Cout, M) view ----
    y2d = conv_y.reshape(rows, m_pad)
    out2d = pl.pallas_call(
        _bn_relu_kernel,
        out_shape=jax.ShapeDtypeStruct((rows, m_pad), jnp.float32),
        grid_spec=pltpu.PrefetchScalarGridSpec(
            num_scalar_prefetch=0, grid=(n_tiles,),
            in_specs=[pl.BlockSpec((rows, tile_m), lambda t: (0, t)),
                      pl.BlockSpec((rows, 1), lambda t: (0, 0)),
                      pl.BlockSpec((rows, 1), lambda t: (0, 0))],
            out_specs=pl.BlockSpec((rows, tile_m), lambda t: (0, t))),
        compiler_params=pltpu.CompilerParams(
            dimension_semantics=("arbitrary",),
            vmem_limit_bytes=32 * 1024 * 1024),
        input_output_aliases={0: 0},
    )(y2d, scale2d, shift2d)

    # --- glue: dense columns -> NCHW (slice off pad/garbage, strided row/col pick) -
    out = out2d[:, :m_dense].reshape(n, cout, hd, wp)
    out = out[:, :, :(h_out - 1) * stride + 1:stride,
              :(w_out - 1) * stride + 1:stride]
    return out


# ---------------------------------------------------------------------------
# Spectral norm applied to the weight in glue (deterministic power iteration)
# ---------------------------------------------------------------------------
def spectral_normalize(w_oihw, key, n_iters=30):
    """Divide conv weight (Cout, Cin, KH, KW) by its largest singular value."""
    # TODO(synk): not bit-matched to torch's stateful 1-step-per-forward power
    # iteration; uses a deterministic 30-step estimate instead.
    cout = w_oihw.shape[0]
    w_mat = w_oihw.reshape(cout, -1)
    u = jax.random.normal(key, (cout,), jnp.float32)
    u = u / (jnp.linalg.norm(u) + 1e-12)
    v = None
    for _ in range(n_iters):
        v = w_mat.T @ u
        v = v / (jnp.linalg.norm(v) + 1e-12)
        u = w_mat @ v
        u = u / (jnp.linalg.norm(u) + 1e-12)
    sigma = u @ (w_mat @ v)
    return w_oihw / sigma


# ---------------------------------------------------------------------------
# Plain-JAX reference (includes the conv bias, which train-mode BN cancels)
# ---------------------------------------------------------------------------
def reference(x_nchw, w_hwio, bias, gamma, beta, *, kernel_size, stride,
              dilation, eps=1e-5):
    pad = (kernel_size + (kernel_size - 1) * (dilation - 1) - 1) // 2
    xp = jnp.pad(x_nchw, ((0, 0), (0, 0), (pad, pad), (pad, pad)), mode="reflect")
    w_oihw = jnp.transpose(w_hwio, (3, 2, 0, 1))
    y = lax.conv_general_dilated(
        xp, w_oihw, window_strides=(stride, stride), padding="VALID",
        rhs_dilation=(dilation, dilation),
        dimension_numbers=("NCHW", "OIHW", "NCHW"),
        precision=lax.Precision.HIGHEST)
    y = y + bias.reshape(1, -1, 1, 1)
    mean = jnp.mean(y, axis=(0, 2, 3), keepdims=True)
    var = jnp.mean((y - mean) ** 2, axis=(0, 2, 3), keepdims=True)
    y = (y - mean) * lax.rsqrt(var + eps)
    y = y * gamma.reshape(1, -1, 1, 1) + beta.reshape(1, -1, 1, 1)
    return jnp.maximum(y, 0.0)


if __name__ == "__main__":
    # EncConvBlock(in_channels=4, out_channels=8, kernel_size=3, stride=1,
    #              padding=0, dilation=1, use_bias=True, use_sn=True)
    in_channels, out_channels = 4, 8
    kernel_size, stride, dilation = 3, 1, 1
    use_bias = True

    key = jax.random.PRNGKey(0)
    kx, kw, kb, ku = jax.random.split(key, 4)

    x = jax.random.normal(kx, (2, in_channels, 16, 16), jnp.float32)

    w_oihw = 0.1 * jax.random.normal(
        kw, (out_channels, in_channels, kernel_size, kernel_size), jnp.float32)
    w_oihw = spectral_normalize(w_oihw, ku)
    w_hwio = jnp.transpose(w_oihw, (2, 3, 1, 0))         # (KH, KW, Cin, Cout)

    bias = (0.05 * jax.random.normal(kb, (out_channels,), jnp.float32)
            if use_bias else jnp.zeros((out_channels,), jnp.float32))
    gamma = jnp.ones((out_channels,), jnp.float32)        # BatchNorm affine init
    beta = jnp.zeros((out_channels,), jnp.float32)

    fwd = jax.jit(functools.partial(enc_conv_block, kernel_size=kernel_size,
                                    stride=stride, dilation=dilation))
    out = jax.block_until_ready(fwd(x, w_hwio, bias, gamma, beta))

    ref = reference(x, w_hwio, bias, gamma, beta,
                    kernel_size=kernel_size, stride=stride, dilation=dilation)
    assert out.shape == (2, out_channels, 16, 16)
    # bf16 conv operands (f32 accumulation) vs f32 reference -> loosened tolerance.
    assert jnp.allclose(out, ref, atol=2e-2, rtol=2e-2), \
        float(jnp.max(jnp.abs(out - ref)))

    print("KERNEL_OK")
</pallas_src>

<mosaic_0001>
module attributes {stable_mosaic.version = 11 : i64} {
  func.func @_conv_stats_kernel(%arg0: i32, %arg1: i32, %arg2: memref<1x1x4x256xbf16, #tpu.memory_space<vmem>>, %arg3: memref<9x8x4xbf16, #tpu.memory_space<vmem>>, %arg4: memref<1x128xf32, #tpu.memory_space<vmem>>, %arg5: memref<1x8x128xf32, #tpu.memory_space<vmem>>, %arg6: memref<1x8x1xf32, #tpu.memory_space<vmem>>, %arg7: memref<1x8x1xf32, #tpu.memory_space<vmem>>) attributes {dimension_semantics = [#tpu.dimension_semantics<parallel>, #tpu.dimension_semantics<arbitrary>], iteration_bounds = array<i64: 2, 3>, scalar_prefetch = 0 : i64, scratch_operands = 0 : i64, tpu.core_type = #tpu.core_type<tc>, window_params = [{transform_indices = @transform_0, window_bounds = array<i64: 1, 1, 4, 256>}, {pipeline_mode = #tpu.pipeline_mode<synchronous>, transform_indices = @transform_1, window_bounds = array<i64: 9, 8, 4>}, {transform_indices = @transform_2, window_bounds = array<i64: 1, 128>}, {transform_indices = @transform_3, window_bounds = array<i64: 1, 8, 128>}, {transform_indices = @transform_4, window_bounds = array<i64: 1, 8, 1>}, {transform_indices = @transform_5, window_bounds = array<i64: 1, 8, 1>}]} {
    %c0_i32 = arith.constant 0 : i32
    %0 = arith.cmpi eq, %arg1, %c0_i32 : i32
    %1 = arith.extui %0 : i1 to i32
    %c0_i32_0 = arith.constant 0 : i32
    %2 = arith.cmpi ne, %1, %c0_i32_0 : i32
    scf.if %2 {
      %cst_50 = arith.constant 0.000000e+00 : f32
      %72 = vector.broadcast %cst_50 : f32 to vector<1x8x1xf32>
      %c0_51 = arith.constant 0 : index
      %c0_52 = arith.constant 0 : index
      %c0_53 = arith.constant 0 : index
      %73 = vector.load %arg6[%c0_51, %c0_52, %c0_53] : memref<1x8x1xf32, #tpu.memory_space<vmem>>, vector<1x8x1xf32>
      tpu.vector_store %arg6[%c0_51, %c0_52, %c0_53], %72 {strides = array<i32>} : memref<1x8x1xf32, #tpu.memory_space<vmem>>, vector<1x8x1xf32>,
      %cst_54 = arith.constant 0.000000e+00 : f32
      %74 = vector.broadcast %cst_54 : f32 to vector<1x8x1xf32>
      %c0_55 = arith.constant 0 : index
      %c0_56 = arith.constant 0 : index
      %c0_57 = arith.constant 0 : index
      %75 = vector.load %arg7[%c0_55, %c0_56, %c0_57] : memref<1x8x1xf32, #tpu.memory_space<vmem>>, vector<1x8x1xf32>
      tpu.vector_store %arg7[%c0_55, %c0_56, %c0_57], %74 {strides = array<i32>} : memref<1x8x1xf32, #tpu.memory_space<vmem>>, vector<1x8x1xf32>,
    } else {
    }
    %c0 = arith.constant 0 : index
    %c0_1 = arith.constant 0 : index
    %c0_2 = arith.constant 0 : index
    %c0_3 = arith.constant 0 : index
    %3 = vector.load %arg2[%c0, %c0_1, %c0_2, %c0_3] : memref<1x1x4x256xbf16, #tpu.memory_space<vmem>>, vector<1x1x4x256xbf16>
    %4 = vector.shape_cast %3 : vector<1x1x4x256xbf16> to vector<4x256xbf16>
    %c0_4 = arith.constant 0 : index
    %c0_5 = arith.constant 0 : index
    %c0_6 = arith.constant 0 : index
    %5 = vector.load %arg3[%c0_4, %c0_5, %c0_6] : memref<9x8x4xbf16, #tpu.memory_space<vmem>>, vector<1x8x4xbf16>
    %6 = vector.shape_cast %5 : vector<1x8x4xbf16> to vector<8x4xbf16>
    %7 = vector.extract_strided_slice %4 {offsets = [0, 0], sizes = [4, 128], strides = [1, 1]} : vector<4x256xbf16> to vector<4x128xbf16>
    %cst = arith.constant dense<0.000000e+00> : vector<8x128xf32>
    %8 = tpu.matmul %6, %7, %cst {dimension_numbers = #tpu.dot_dimension_numbers<[1], [0], [0], [1], [0, 0, 1, 1], [], []>} : vector<8x4xbf16>, vector<4x128xbf16>, vector<8x128xf32> -> vector<8x128xf32>
    %c1 = arith.constant 1 : index
    %c0_7 = arith.constant 0 : index
    %c0_8 = arith.constant 0 : index
    %9 = vector.load %arg3[%c1, %c0_7, %c0_8] : memref<9x8x4xbf16, #tpu.memory_space<vmem>>, vector<1x8x4xbf16>
    %10 = vector.shape_cast %9 : vector<1x8x4xbf16> to vector<8x4xbf16>
    %11 = vector.extract_strided_slice %4 {offsets = [0, 1], sizes = [4, 128], strides = [1, 1]} : vector<4x256xbf16> to vector<4x128xbf16>
    %cst_9 = arith.constant dense<0.000000e+00> : vector<8x128xf32>
    %12 = tpu.matmul %10, %11, %cst_9 {dimension_numbers = #tpu.dot_dimension_numbers<[1], [0], [0], [1], [0, 0, 1, 1], [], []>} : vector<8x4xbf16>, vector<4x128xbf16>, vector<8x128xf32> -> vector<8x128xf32>
    %13 = arith.addf %8, %12 : vector<8x128xf32>
    %c2 = arith.constant 2 : index
    %c0_10 = arith.constant 0 : index
    %c0_11 = arith.constant 0 : index
    %14 = vector.load %arg3[%c2, %c0_10, %c0_11] : memref<9x8x4xbf16, #tpu.memory_space<vmem>>, vector<1x8x4xbf16>
    %15 = vector.shape_cast %14 : vector<1x8x4xbf16> to vector<8x4xbf16>
    %16 = vector.extract_strided_slice %4 {offsets = [0, 2], sizes = [4, 128], strides = [1, 1]} : vector<4x256xbf16> to vector<4x128xbf16>
    %cst_12 = arith.constant dense<0.000000e+00> : vector<8x128xf32>
    %17 = tpu.matmul %15, %16, %cst_12 {dimension_numbers = #tpu.dot_dimension_numbers<[1], [0], [0], [1], [0, 0, 1, 1], [], []>} : vector<8x4xbf16>, vector<4x128xbf16>, vector<8x128xf32> -> vector<8x128xf32>
    %18 = arith.addf %13, %17 : vector<8x128xf32>
    %c3 = arith.constant 3 : index
    %c0_13 = arith.constant 0 : index
    %c0_14 = arith.constant 0 : index
    %19 = vector.load %arg3[%c3, %c0_13, %c0_14] : memref<9x8x4xbf16, #tpu.memory_space<vmem>>, vector<1x8x4xbf16>
    %20 = vector.shape_cast %19 : vector<1x8x4xbf16> to vector<8x4xbf16>
    %21 = vector.extract_strided_slice %4 {offsets = [0, 18], sizes = [4, 128], strides = [1, 1]} : vector<4x256xbf16> to vector<4x128xbf16>
    %cst_15 = arith.constant dense<0.000000e+00> : vector<8x128xf32>
    %22 = tpu.matmul %20, %21, %cst_15 {dimension_numbers = #tpu.dot_dimension_numbers<[1], [0], [0], [1], [0, 0, 1, 1], [], []>} : vector<8x4xbf16>, vector<4x128xbf16>, vector<8x128xf32> -> vector<8x128xf32>
    %23 = arith.addf %18, %22 : vector<8x128xf32>
    %c4 = arith.constant 4 : index
    %c0_16 = arith.constant 0 : index
    %c0_17 = arith.constant 0 : index
    %24 = vector.load %arg3[%c4, %c0_16, %c0_17] : memref<9x8x4xbf16, #tpu.memory_space<vmem>>, vector<1x8x4xbf16>
    %25 = vector.shape_cast %24 : vector<1x8x4xbf16> to vector<8x4xbf16>
    %26 = vector.extract_strided_slice %4 {offsets = [0, 19], sizes = [4, 128], strides = [1, 1]} : vector<4x256xbf16> to vector<4x128xbf16>
    %cst_18 = arith.constant dense<0.000000e+00> : vector<8x128xf32>
    %27 = tpu.matmul %25, %26, %cst_18 {dimension_numbers = #tpu.dot_dimension_numbers<[1], [0], [0], [1], [0, 0, 1, 1], [], []>} : vector<8x4xbf16>, vector<4x128xbf16>, vector<8x128xf32> -> vector<8x128xf32>
    %28 = arith.addf %23, %27 : vector<8x128xf32>
    %c5 = arith.constant 5 : index
    %c0_19 = arith.constant 0 : index
    %c0_20 = arith.constant 0 : index
    %29 = vector.load %arg3[%c5, %c0_19, %c0_20] : memref<9x8x4xbf16, #tpu.memory_space<vmem>>, vector<1x8x4xbf16>
    %30 = vector.shape_cast %29 : vector<1x8x4xbf16> to vector<8x4xbf16>
    %31 = vector.extract_strided_slice %4 {offsets = [0, 20], sizes = [4, 128], strides = [1, 1]} : vector<4x256xbf16> to vector<4x128xbf16>
    %cst_21 = arith.constant dense<0.000000e+00> : vector<8x128xf32>
    %32 = tpu.matmul %30, %31, %cst_21 {dimension_numbers = #tpu.dot_dimension_numbers<[1], [0], [0], [1], [0, 0, 1, 1], [], []>} : vector<8x4xbf16>, vector<4x128xbf16>, vector<8x128xf32> -> vector<8x128xf32>
    %33 = arith.addf %28, %32 : vector<8x128xf32>
    %c6 = arith.constant 6 : index
    %c0_22 = arith.constant 0 : index
    %c0_23 = arith.constant 0 : index
    %34 = vector.load %arg3[%c6, %c0_22, %c0_23] : memref<9x8x4xbf16, #tpu.memory_space<vmem>>, vector<1x8x4xbf16>
    %35 = vector.shape_cast %34 : vector<1x8x4xbf16> to vector<8x4xbf16>
    %36 = vector.extract_strided_slice %4 {offsets = [0, 36], sizes = [4, 128], strides = [1, 1]} : vector<4x256xbf16> to vector<4x128xbf16>
    %cst_24 = arith.constant dense<0.000000e+00> : vector<8x128xf32>
    %37 = tpu.matmul %35, %36, %cst_24 {dimension_numbers = #tpu.dot_dimension_numbers<[1], [0], [0], [1], [0, 0, 1, 1], [], []>} : vector<8x4xbf16>, vector<4x128xbf16>, vector<8x128xf32> -> vector<8x128xf32>
    %38 = arith.addf %33, %37 : vector<8x128xf32>
    %c7 = arith.constant 7 : index
    %c0_25 = arith.constant 0 : index
    %c0_26 = arith.constant 0 : index
    %39 = vector.load %arg3[%c7, %c0_25, %c0_26] : memref<9x8x4xbf16, #tpu.memory_space<vmem>>, vector<1x8x4xbf16>
    %40 = vector.shape_cast %39 : vector<1x8x4xbf16> to vector<8x4xbf16>
    %41 = vector.extract_strided_slice %4 {offsets = [0, 37], sizes = [4, 128], strides = [1, 1]} : vector<4x256xbf16> to vector<4x128xbf16>
    %cst_27 = arith.constant dense<0.000000e+00> : vector<8x128xf32>
    %42 = tpu.matmul %40, %41, %cst_27 {dimension_numbers = #tpu.dot_dimension_numbers<[1], [0], [0], [1], [0, 0, 1, 1], [], []>} : vector<8x4xbf16>, vector<4x128xbf16>, vector<8x128xf32> -> vector<8x128xf32>
    %43 = arith.addf %38, %42 : vector<8x128xf32>
    %c8 = arith.constant 8 : index
    %c0_28 = arith.constant 0 : index
    %c0_29 = arith.constant 0 : index
    %44 = vector.load %arg3[%c8, %c0_28, %c0_29] : memref<9x8x4xbf16, #tpu.memory_space<vmem>>, vector<1x8x4xbf16>
    %45 = vector.shape_cast %44 : vector<1x8x4xbf16> to vector<8x4xbf16>
    %46 = vector.extract_strided_slice %4 {offsets = [0, 38], sizes = [4, 128], strides = [1, 1]} : vector<4x256xbf16> to vector<4x128xbf16>
    %cst_30 = arith.constant dense<0.000000e+00> : vector<8x128xf32>
    %47 = tpu.matmul %45, %46, %cst_30 {dimension_numbers = #tpu.dot_dimension_numbers<[1], [0], [0], [1], [0, 0, 1, 1], [], []>} : vector<8x4xbf16>, vector<4x128xbf16>, vector<8x128xf32> -> vector<8x128xf32>
    %48 = arith.addf %43, %47 : vector<8x128xf32>
    %c0_31 = arith.constant 0 : index
    %c0_32 = arith.constant 0 : index
    %c0_33 = arith.constant 0 : index
    %49 = vector.load %arg5[%c0_31, %c0_32, %c0_33] : memref<1x8x128xf32, #tpu.memory_space<vmem>>, vector<1x8x128xf32>
    %50 = vector.shape_cast %49 : vector<1x8x128xf32> to vector<8x128xf32>
    %51 = vector.shape_cast %48 : vector<8x128xf32> to vector<1x8x128xf32>
    tpu.vector_store %arg5[%c0_31, %c0_32, %c0_33], %51 {strides = array<i32>} : memref<1x8x128xf32, #tpu.memory_space<vmem>>, vector<1x8x128xf32>,
    %c0_34 = arith.constant 0 : index
    %c0_35 = arith.constant 0 : index
    %52 = vector.load %arg4[%c0_34, %c0_35] : memref<1x128xf32, #tpu.memory_space<vmem>>, vector<1x128xf32>
    %53 = vector.broadcast %52 : vector<1x128xf32> to vector<8x128xf32>
    %54 = arith.mulf %48, %53 : vector<8x128xf32>
    %c0_36 = arith.constant 0 : index
    %c0_37 = arith.constant 0 : index
    %c0_38 = arith.constant 0 : index
    %55 = vector.load %arg6[%c0_36, %c0_37, %c0_38] : memref<1x8x1xf32, #tpu.memory_space<vmem>>, vector<1x8x1xf32>
    %56 = vector.shape_cast %55 : vector<1x8x1xf32> to vector<8x1xf32>
    %cst_39 = arith.constant dense<0.000000e+00> : vector<8xf32>
    %57 = vector.multi_reduction <add>, %54, %cst_39 [1] : vector<8x128xf32> to vector<8xf32>
    %58 = vector.shape_cast %57 : vector<8xf32> to vector<8x1xf32>
    %59 = arith.addf %56, %58 : vector<8x1xf32>
    %c0_40 = arith.constant 0 : index
    %c0_41 = arith.constant 0 : index
    %c0_42 = arith.constant 0 : index
    %60 = vector.load %arg6[%c0_40, %c0_41, %c0_42] : memref<1x8x1xf32, #tpu.memory_space<vmem>>, vector<1x8x1xf32>
    %61 = vector.shape_cast %60 : vector<1x8x1xf32> to vector<8x1xf32>
    %62 = vector.shape_cast %59 : vector<8x1xf32> to vector<1x8x1xf32>
    tpu.vector_store %arg6[%c0_40, %c0_41, %c0_42], %62 {strides = array<i32>} : memref<1x8x1xf32, #tpu.memory_space<vmem>>, vector<1x8x1xf32>,
    %c0_43 = arith.constant 0 : index
    %c0_44 = arith.constant 0 : index
    %c0_45 = arith.constant 0 : index
    %63 = vector.load %arg7[%c0_43, %c0_44, %c0_45] : memref<1x8x1xf32, #tpu.memory_space<vmem>>, vector<1x8x1xf32>
    %64 = vector.shape_cast %63 : vector<1x8x1xf32> to vector<8x1xf32>
    %65 = arith.mulf %54, %48 : vector<8x128xf32>
    %cst_46 = arith.constant dense<0.000000e+00> : vector<8xf32>
    %66 = vector.multi_reduction <add>, %65, %cst_46 [1] : vector<8x128xf32> to vector<8xf32>
    %67 = vector.shape_cast %66 : vector<8xf32> to vector<8x1xf32>
    %68 = arith.addf %64, %67 : vector<8x1xf32>
    %c0_47 = arith.constant 0 : index
    %c0_48 = arith.constant 0 : index
    %c0_49 = arith.constant 0 : index
    %69 = vector.load %arg7[%c0_47, %c0_48, %c0_49] : memref<1x8x1xf32, #tpu.memory_space<vmem>>, vector<1x8x1xf32>
    %70 = vector.shape_cast %69 : vector<1x8x1xf32> to vector<8x1xf32>
    %71 = vector.shape_cast %68 : vector<8x1xf32> to vector<1x8x1xf32>
    tpu.vector_store %arg7[%c0_47, %c0_48, %c0_49], %71 {strides = array<i32>} : memref<1x8x1xf32, #tpu.memory_space<vmem>>, vector<1x8x1xf32>,
    return
  }
  func.func @transform_0(%arg0: i32, %arg1: i32) -> (i32, i32, i32, i32) {
    %c0_i32 = arith.constant 0 : i32
    %c0_i32_0 = arith.constant 0 : i32
    %c0_i32_1 = arith.constant 0 : i32
    return %arg0, %arg1, %c0_i32, %c0_i32_0 : i32, i32, i32, i32
  }
  func.func @transform_1(%arg0: i32, %arg1: i32) -> (i32, i32, i32) {
    %c0_i32 = arith.constant 0 : i32
    %c0_i32_0 = arith.constant 0 : i32
    %c0_i32_1 = arith.constant 0 : i32
    %c0_i32_2 = arith.constant 0 : i32
    return %c0_i32, %c0_i32_0, %c0_i32_1 : i32, i32, i32
  }
  func.func @transform_2(%arg0: i32, %arg1: i32) -> (i32, i32) {
    %c0_i32 = arith.constant 0 : i32
    %c0_i32_0 = arith.constant 0 : i32
    return %c0_i32, %arg1 : i32, i32
  }
  func.func @transform_3(%arg0: i32, %arg1: i32) -> (i32, i32, i32) {
    %c0_i32 = arith.constant 0 : i32
    %c0_i32_0 = arith.constant 0 : i32
    return %arg0, %c0_i32, %arg1 : i32, i32, i32
  }
  func.func @transform_4(%arg0: i32, %arg1: i32) -> (i32, i32, i32) {
    %c0_i32 = arith.constant 0 : i32
    %c0_i32_0 = arith.constant 0 : i32
    %c0_i32_1 = arith.constant 0 : i32
    return %arg0, %c0_i32, %c0_i32_0 : i32, i32, i32
  }
  func.func @transform_5(%arg0: i32, %arg1: i32) -> (i32, i32, i32) {
    %c0_i32 = arith.constant 0 : i32
    %c0_i32_0 = arith.constant 0 : i32
    %c0_i32_1 = arith.constant 0 : i32
    return %arg0, %c0_i32, %c0_i32_0 : i32, i32, i32
  }
}

module attributes {stable_mosaic.version = 11 : i64} {
  func.func @_bn_relu_kernel(%arg0: i32, %arg1: memref<16x128xf32, #tpu.memory_space<vmem>>, %arg2: memref<16x1xf32, #tpu.memory_space<vmem>>, %arg3: memref<16x1xf32, #tpu.memory_space<vmem>>, %arg4: memref<16x128xf32, #tpu.memory_space<vmem>>) attributes {dimension_semantics = [#tpu.dimension_semantics<arbitrary>], iteration_bounds = array<i64: 3>, scalar_prefetch = 0 : i64, scratch_operands = 0 : i64, tpu.core_type = #tpu.core_type<tc>, window_params = [{transform_indices = @transform_0, window_bounds = array<i64: 16, 128>}, {pipeline_mode = #tpu.pipeline_mode<synchronous>, transform_indices = @transform_1, window_bounds = array<i64: 16, 1>}, {pipeline_mode = #tpu.pipeline_mode<synchronous>, transform_indices = @transform_2, window_bounds = array<i64: 16, 1>}, {transform_indices = @transform_3, window_bounds = array<i64: 16, 128>}]} {
    %c0 = arith.constant 0 : index
    %c0_0 = arith.constant 0 : index
    %0 = vector.load %arg1[%c0, %c0_0] : memref<16x128xf32, #tpu.memory_space<vmem>>, vector<16x128xf32>
    %c0_1 = arith.constant 0 : index
    %c0_2 = arith.constant 0 : index
    %1 = vector.load %arg2[%c0_1, %c0_2] : memref<16x1xf32, #tpu.memory_space<vmem>>, vector<16x1xf32>
    %2 = vector.broadcast %1 : vector<16x1xf32> to vector<16x128xf32>
    %3 = arith.mulf %0, %2 : vector<16x128xf32>
    %c0_3 = arith.constant 0 : index
    %c0_4 = arith.constant 0 : index
    %4 = vector.load %arg3[%c0_3, %c0_4] : memref<16x1xf32, #tpu.memory_space<vmem>>, vector<16x1xf32>
    %5 = vector.broadcast %4 : vector<16x1xf32> to vector<16x128xf32>
    %6 = arith.addf %3, %5 : vector<16x128xf32>
    %cst = arith.constant 0.000000e+00 : f32
    %7 = vector.broadcast %cst : f32 to vector<16x128xf32>
    %8 = arith.maximumf %6, %7 : vector<16x128xf32>
    %c0_5 = arith.constant 0 : index
    %c0_6 = arith.constant 0 : index
    %9 = vector.load %arg4[%c0_5, %c0_6] : memref<16x128xf32, #tpu.memory_space<vmem>>, vector<16x128xf32>
    tpu.vector_store %arg4[%c0_5, %c0_6], %8 {strides = array<i32>} : memref<16x128xf32, #tpu.memory_space<vmem>>, vector<16x128xf32>,
    return
  }
  func.func @transform_0(%arg0: i32) -> (i32, i32) {
    %c0_i32 = arith.constant 0 : i32
    %c0_i32_0 = arith.constant 0 : i32
    return %c0_i32, %arg0 : i32, i32
  }
  func.func @transform_1(%arg0: i32) -> (i32, i32) {
    %c0_i32 = arith.constant 0 : i32
    %c0_i32_0 = arith.constant 0 : i32
    %c0_i32_1 = arith.constant 0 : i32
    return %c0_i32, %c0_i32_0 : i32, i32
  }
  func.func @transform_2(%arg0: i32) -> (i32, i32) {
    %c0_i32 = arith.constant 0 : i32
    %c0_i32_0 = arith.constant 0 : i32
    %c0_i32_1 = arith.constant 0 : i32
    return %c0_i32, %c0_i32_0 : i32, i32
  }
  func.func @transform_3(%arg0: i32) -> (i32, i32) {
    %c0_i32 = arith.constant 0 : i32
    %c0_i32_0 = arith.constant 0 : i32
    return %c0_i32, %arg0 : i32, i32
  }
}

</mosaic_0001>

<bundles_post_ra>
// kernel: tile.13
= control target key start
LH: loop header
LB: loop body
LE: loop exit
PB: predicated region body
PF: predicated region fallthrough
CT: control target
= control target key end

     0   :  { %s22_s0 = inlined_call_operand.vmem [shape: f32[8], index: 0, kind: input, shape index: {}]   ;;  %s23_s1 = inlined_call_operand.vmem [shape: f32[2,8], index: 1, kind: output, shape index: {}]  }
   0x1   :  { %v4_v0 = vld [vmem:[%s22_s0] ss:$0 sm:$0xff] }
   0x2   :  { %5 = vst [vmem:[%s23_s1] sm:$0x3] %v4_v0 }

// kernel: tile.0
= control target key start
LH: loop header
LB: loop body
LE: loop exit
PB: predicated region body
PF: predicated region fallthrough
CT: control target
= control target key end

     0   :  { %s66_s8 = smov 125   ;;  %vm7_vm0 = vcmask 7168   ;;  %s67_s11 = smov 126   ;;  %s117_s0 = inlined_call_operand.vmem [shape: f32[2,8], index: 0, kind: input, shape index: {}]   ;;  %s118_s1 = inlined_call_operand.vmem [shape: f32[16,1], index: 1, kind: output, shape index: {}]  }
   0x1   :  { %v4_v0 = vld [vmem:[%s117_s0] sm:$0x3]  ;;  %s65_s0 = smov 127   ;;  %s68_s12 = smov 124  }
   0x2   :  { %5 = vst [vmem:[#allocation0] sm:$0x3] %v4_v0  ;;  %s69_s13 = smov 123   ;;  %s70_s14 = smov 122  }
   0x3   :  { %s71_s15 = smov 121  }
   0x9   :  { %v9_v1 = vld [vmem:[#allocation0] sm:$0x3]  }
   0xa   :  { %v21_v2 = vld [vmem:[#allocation0] sm:$0x3]   ;;  %10 = vrot.lane.b32.xlu0 %v9_v1, %s65_s0 }
   0xb   :  { %22 = vrot.lane.b32.xlu1 %v21_v2, %s66_s8  ;;  %v15_v3 = vld [vmem:[#allocation0] sm:$0x3]  }
   0xc   :  { %v27_v4 = vld [vmem:[#allocation0] sm:$0x3]  }
   0xd   :  { %v6_v5 = vld [vmem:[#allocation0] sm:$0x3]  }
   0xe   :  { %8 = vst.msk [vmem:[%s118_s1] ss:$8 sm:$0x3] %vm7_vm0, %v6_v5   ;;  %16 = vrot.lane.b32.xlu0 %v15_v3, %s67_s11  ;;  %v33_v6 = vld [vmem:[#allocation0] sm:$0x3]  }
   0xf   :  { %28 = vrot.lane.b32.xlu1 %v27_v4, %s68_s12  ;;  %v39_v7 = vld [vmem:[#allocation0] sm:$0x3]  }
  0x10   :  { %v45_v8 = vld [vmem:[#allocation0] sm:$0x3]  }
  0x12   :  { %34 = vrot.lane.b32.xlu0 %v33_v6, %s69_s13 }
  0x13   :  { %40 = vrot.lane.b32.xlu1 %v39_v7, %s70_s14 }
  0x16   :  { %46 = vrot.lane.b32.xlu0 %v45_v8, %s71_s15 }
  0x7c   :  { %v11_v9 = vpop.permute.xlu0 %10  }
  0x7d   :  { %v23_v10 = vpop.permute.xlu1 %22   ;;  %51 = vst.msk [vmem:[%s118_s1 + $0x1] ss:$8 sm:$0x3] %vm7_vm0, %v11_v9  }
  0x7e   :  { %53 = vst.msk [vmem:[%s118_s1 + $0x3] ss:$8 sm:$0x3] %vm7_vm0, %v23_v10  }
  0x80   :  { %v17_v11 = vpop.permute.xlu0 %16  }
  0x81   :  { %v29_v12 = vpop.permute.xlu1 %28   ;;  %52 = vst.msk [vmem:[%s118_s1 + $0x2] ss:$8 sm:$0x3] %vm7_vm0, %v17_v11  }
  0x82   :  { %54 = vst.msk [vmem:[%s118_s1 + $0x4] ss:$8 sm:$0x3] %vm7_vm0, %v29_v12  }
  0x84   :  { %v35_v13 = vpop.permute.xlu0 %34  }
  0x85   :  { %v41_v14 = vpop.permute.xlu1 %40   ;;  %55 = vst.msk [vmem:[%s118_s1 + $0x5] ss:$8 sm:$0x3] %vm7_vm0, %v35_v13  }
  0x86   :  { %56 = vst.msk [vmem:[%s118_s1 + $0x6] ss:$8 sm:$0x3] %vm7_vm0, %v41_v14  }
  0x88   :  { %v47_v15 = vpop.permute.xlu0 %46  }
  0x89   :  { %57 = vst.msk [vmem:[%s118_s1 + $0x7] ss:$8 sm:$0x3] %vm7_vm0, %v47_v15  }

// kernel: enc_conv_block.3
= control target key start
LH: loop header
LB: loop body
LE: loop exit
PB: predicated region body
PF: predicated region fallthrough
CT: control target
= control target key end

     0   :  { %s423_s12 = smov 0   ;;  %s425_s13 = smov 0   ;;  %s495_s0 = inlined_call_operand.vmem [shape: f32[16,384], index: 0, kind: input, shape index: {}, may-alias: {0,3}]   ;;  %s496_s1 = inlined_call_operand.vmem [shape: f32[16,1], index: 1, kind: input, shape index: {}]   ;;  %s497_s2 = inlined_call_operand.vmem [shape: f32[16,1], index: 2, kind: input, shape index: {}]   ;;  %s498_s3 = inlined_call_operand.vmem [shape: f32[16,384], index: 3, kind: output, shape index: {}, may-alias: {0,3}]  }
   0x1   :  { %s427_s14 = smov 0  }
   0x2 LB: > { %s338_s15 = sadd.s32 4294967295, %s400_s14   ;;  %s440_s16 = sadd.s32 1, %s400_s14   ;;  %s400_s14 = sphi %s427_s14, %s502_s14   ;;  %s396_s13 = sphi %s425_s13, %s501_s13   ;;  %s392_s12 = sphi %s423_s12, %s500_s12  }
   0x3   : > { %s17_s17 = ssub.s32 %s400_s14, %s440_s16  ;;  %s20_s18 = sadd.s32 1, %s396_s13 }
   0x4   : > { %p18_p0 = scmp.eq.s32.totalorder %s17_s17, 0  ;;  %p27_p1 = scmp.ne.s32.totalorder %s396_s13, %s392_s12 }
   0x5   : > { %p28_p2 = scmp.eq.s32.totalorder %s400_s14, 0  ;;  %p99_p3 = scmp.eq.s32.totalorder %s338_s15, 2 }
   0x6   : > { %s451_s19 = scalar_select %p18_p0, %s396_s13, %s20_s18  }
   0x7   : > { %p29_p4 = por %p28_p2, %p27_p1  ;;  %p453_p5 = por %p99_p3, %p27_p1 }
   0x8   : > { %p341_p6 = scmp.ge.s32.totalorder %s400_s14, 3 }
   0xa   : > { %127 = sbr.rel (%p341_p6) target bundleno = 24 (0x18), region = 24 }
  0x11   : > { %130 = sbr.rel (!%p29_p4) target bundleno = 24 (0x18), region = 28  ;;  %s132_s21 = sand.u32 (%p29_p4), 1, %s396_s13  }
  0x12   : > { %s343_s22 = sshll.u32 (%p29_p4), %s400_s14, 3  ;;  %s342_s23 = sshll.u32 (%p29_p4), %s132_s21, 4 }
  0x13   : > { %s136_s26 = scalar_lea.vmem (%p29_p4), %s495_s0, %s343_s22  ;;  %s134_s27 = scalar_lea.vmem (%p29_p4), [#allocation2], %s342_s23 }
  0x14   : > { %v166_v0 = vld [vmem:[%s136_s26] sm:$0xff] (%p29_p4)  ;;  %v168_v1 = vld [vmem:[%s136_s26 + $0x18] sm:$0xff] (%p29_p4) }
  0x15   : > { %167 = vst [vmem:[%s134_s27] sm:$0xff] (%p29_p4), %v166_v0  ;;  %169 = vst [vmem:[%s134_s27 + $0x8] sm:$0xff] (%p29_p4), %v168_v1 }
  0x18 PF: > { %p344_p7 = scmp.ge.s32.totalorder %s400_s14, 1  ;;  %p174_p8 = scmp.lt.s32.totalorder %s400_s14, 4 }
  0x1a   : > { %p175_p9 = pnand %p344_p7, %p174_p8 }
  0x1b   : > { %v219_v2 = vld [vmem:[%s497_s2] sm:$0xff] (!%p175_p9)  ;;  %v402_v4 = vmov (!%p175_p9), 0   ;;  %v220_v5 = vld [vmem:[%s497_s2 + $0x8] sm:$0xff] (!%p175_p9)  ;;  %s181_s9 = sand.u32 (!%p175_p9), 1, %s392_s12  }
  0x1c   : > { %178 = sbr.rel (%p175_p9) target bundleno = 176 (0xb0), region = 66  ;;  %v205_v3 = vld [vmem:[%s496_s1] sm:$0xff] (!%p175_p9)  ;;  %377 = vset.pattern.permute.xlu1 (!%p175_p9), %v402_v4  ;;  %376 = vset.pattern.permute.xlu0 (!%p175_p9), %v402_v4  ;;  %v206_v6 = vld [vmem:[%s496_s1 + $0x8] sm:$0xff] (!%p175_p9)  ;;  %s345_s10 = sshll.u32 (!%p175_p9), %s181_s9, 4 }
  0x1d   : > { %223 = vperm.xlu1 (!%p175_p9), %377, %v219_v2   ;;  %209 = vperm.xlu0 (!%p175_p9), %376, %v205_v3   ;;  %s183_s11 = scalar_lea.vmem (!%p175_p9), [#allocation2], %s345_s10  ;;  %s202_s17 = scalar_lea.vmem (!%p175_p9), [#allocation3], %s345_s10 }
  0x1e   : > { %v203_v7 = vld [vmem:[%s183_s11] sm:$0xff] (!%p175_p9)  ;;  %v204_v11 = vld [vmem:[%s183_s11 + $0x8] sm:$0xff] (!%p175_p9) }
  0x21   : > { %228 = vperm.xlu1 (!%p175_p9), %377, %v220_v5   ;;  %214 = vperm.xlu0 (!%p175_p9), %376, %v206_v6  }
  0x23   : > { %s348_s12 = sshll.u32 (%p453_p5), %s338_s15, 3 }
  0x24   : > { %s245_s22 = scalar_lea.vmem (%p453_p5), %s498_s3, %s348_s12 }
  0x9c   : > { %v224_v8 = vpop.permute.xlu1 %223  ;;  %v210_v9 = vpop.permute.xlu0 %209 }
  0x9d   : > { %v217_v10 = vmul.f32 %v210_v9, %v203_v7 }
  0x9f   : > { %v231_v12 = vadd.f32 %v224_v8, %v217_v10 }
  0xa0   : > { %v215_v13 = vpop.permute.xlu0 %214  ;;  %v229_v16 = vpop.permute.xlu1 %228 }
  0xa1   : > { %v233_v14 = vmax.f32 %v231_v12, 0.0  ;;  %v218_v15 = vmul.f32 %v215_v13, %v204_v11  ;;  %243 = sbr.rel (!%p453_p5) target bundleno = 176 (0xb0), region = 74 }
  0xa3   : > { %235 = vst [vmem:[%s202_s17] sm:$0xff] %v233_v14  ;;  %v232_v17 = vadd.f32 %v229_v16, %v218_v15 }
  0xa5   : > { %v234_v18 = vmax.f32 %v232_v17, 0.0 }
  0xa7   : > { %236 = vst [vmem:[%s202_s17 + $0x8] sm:$0xff] %v234_v18 }
  0xaa   : > { %v275_v19 = vld [vmem:[%s202_s17] sm:$0xff] }
  0xab   : > { %276 = vst [vmem:[%s245_s22] sm:$0xff] %v275_v19 }
  0xae   : > { %v277_v20 = vld [vmem:[%s202_s17 + $0x8] sm:$0xff] }
  0xaf   : > { %278 = vst [vmem:[%s245_s22 + $0x18] sm:$0xff] %v277_v20 }
  0xb0 PF: > { %p10_p10 = scmp.ge.s32.totalorder %s440_s16, 5   ;;  %s500_s12 = smov %s396_s13 }
  0xb1   : > { %s501_s13 = smov %s451_s19  ;;  %s502_s14 = smov %s440_s16 }
  0xb2   :  { %12 = sbr.rel (!%p10_p10) target bundleno = 2 (0x2), region = 143 }

// kernel: enc_conv_block.2
= control target key start
LH: loop header
LB: loop body
LE: loop exit
PB: predicated region body
PF: predicated region fallthrough
CT: control target
= control target key end

     0   :  { %s1249_s18 = smov 0   ;;  %s1251_s19 = smov 0   ;;  %s1409_s0 = inlined_call_operand.vmem [shape: bf16[2,3,4,256], index: 0, kind: input, shape index: {}]   ;;  %s1410_s1 = inlined_call_operand.vmem [shape: bf16[9,8,4], index: 1, kind: input, shape index: {}]   ;;  %s1411_s2 = inlined_call_operand.vmem [shape: f32[1,384], index: 2, kind: input, shape index: {}]   ;;  %s1412_s3 = inlined_call_operand.vmem [shape: f32[2,8,384], index: 3, kind: output, shape index: {0}]   ;;  %s1413_s4 = inlined_call_operand.vmem [shape: f32[2,8,1], index: 4, kind: output, shape index: {1}]   ;;  %s1414_s5 = inlined_call_operand.vmem [shape: f32[2,8,1], index: 5, kind: output, shape index: {2}]  }
   0x1   :  { %s1253_s20 = smov 0   ;;  %s1255_s21 = smov 0  }
   0x2   :  { %s1257_s22 = smov 0  }
   0x3 LB: > { %1416 = sst [smem:[#allocation2_spill]] %s1201_s21  ;;  %s25_s23 = sadd.s32 1, %s1197_s20  ;;  %s1205_s22 = sphi %s1257_s22, %s16_s22   ;;  %s1201_s21 = sphi %s1255_s21, %s1421_s21   ;;  %s1197_s20 = sphi %s1253_s20, %s1423_s20   ;;  %s1193_s19 = sphi %s1251_s19, %s1419_s19   ;;  %s1189_s18 = sphi %s1249_s18, %s1422_s18  }
   0x4   : > { %s28_s24 = sadd.s32 1, %s1201_s21  ;;  %p26_p0 = scmp.ge.s32.totalorder %s25_s23, 3 }
   0x5   : > { %p985_p1 = scmp.ge.s32.totalorder %s1205_s22, 1  ;;  %p220_p2 = scmp.lt.s32.totalorder %s1205_s22, 7 }
   0x6   : > { %s1425_s23 = smov (%p26_p0, %s25_s23), 0  ;;  %s1427_s24 = smov (!%p26_p0, %s28_s24), %s1201_s21 }
   0x7   : > { %1417 = sst [smem:[#allocation3_spill]] %s1425_s23  ;;  %p221_p3 = pnand %p985_p1, %p220_p2 }
   0x8   : > { %p30_p4 = scmp.ge.s32.totalorder %s1427_s24, 2  ;;  %p266_p5 = scmp.lt.s32.totalorder (!%p221_p3), %s1193_s19, 1 }
   0x9   : > { %224 = sbr.rel (%p221_p3) target bundleno = 575 (0x23f), region = 32  ;;  %p268_p6 = scmp.lt.s32.totalorder (!%p221_p3), %s1189_s18, 2 }
   0xa   : > { %s1429_s24 = smov (%p30_p4, %s1427_s24), 0  ;;  %p991_p7 = scmp.ne.s32.totalorder (!%p221_p3), %s1189_s18, 0 }
   0xb   : > { %1418 = sst [smem:[#allocation4_spill]] %s1429_s24 }
  0x10   : > { %s1431_s19 = smov (!%p266_p5, %s1193_s19), 1  ;;  %vm299_vm0 = vcmask (!%p991_p7), 7168   ;;  %v1207_v0 = vmov (!%p991_p7), 0.0  }
  0x11   : > { %s1283_s25 = scalar_select %p268_p6, %s1189_s18, 2 }
  0x12   : > { %s1113_s26 = smul.u32 6, %s1431_s19  ;;  %s989_s27 = sshll.u32 %s1431_s19, 3 }
  0x13   : > { %s986_s28 = sshll.u32 %s1283_s25, 1  ;;  %s277_s6 = scalar_lea.vmem %s1411_s2, %s1283_s25 }
  0x14   : > { %s272_s7 = sadd.s32 %s1113_s26, %s986_s28  ;;  %s1114_s8 = smul.u32 3, %s1431_s19 }
  0x15   : > { %s987_s9 = sshll.u32 %s272_s7, 1  ;;  %s1293_s12 = scalar_lea.vmem %s1413_s4, %s989_s27 }
  0x16   : > { %s274_s15 = scalar_lea.vmem %s1409_s0, %s987_s9  ;;  %s283_s16 = sadd.s32 %s1114_s8, %s1283_s25  ;;  %300 = vst.msk [vmem:[%s1293_s12] sm:$0xff] (!%p991_p7), %vm299_vm0, %v1207_v0 }
  0x17   : > { %s988_s17 = sshll.u32 %s283_s16, 3  ;;  %s1302_s21 = scalar_lea.vmem %s1414_s5, %s989_s27 }
  0x18   : > { %s1307_s19 = scalar_lea.vmem %s1412_s3, %s988_s17  ;;  %298 = sbr.rel (%p991_p7) target bundleno = 31 (0x1f), region = 36  ;;  %301 = vst.msk [vmem:[%s1302_s21] sm:$0xff] (!%p991_p7), %vm299_vm0, %v1207_v0 }
  0x1f PF: > { %v310_v1 = vlaneseq  ;;  %v1208_v2 = vmov 1983009808   ;;  %v1209_v5 = vmov 0.0   ;;  %v302_v7 = vld [vmem:[%s274_s15] sm:$0xf]  ;;  %vm1210_vm1 = vmmov 0  }
  0x20   : > { %v308_v3 = vunpack.c.l.s4 %v1208_v2  ;;  %1030 = vmatprep.subr.bf16.mxu1 %v1209_v5  ;;  %1054 = vmatprep.subr.bf16.mxu0 %v1209_v5  ;;  %s1211_s18 = smov 127   ;;  %s1212_s23 = smov 109   ;;  %vm319_vm2 = vcmask 1039360   ;;  %vm531_vm3 = vcmask 891904   ;;  %vm325_vm4 = vcmask 1041408  }
  0x21   : > { %v311_v4 = vshrl.u32 %v310_v1, 7  ;;  %1032 = vmatprep.mubr.msk.bf16.mxu1 %vm1210_vm1, %v1209_v5  ;;  %1056 = vmatprep.mubr.msk.bf16.mxu0 %vm1210_vm1, %v1209_v5  ;;  %s1213_s24 = smov 108   ;;  %s1214_s27 = smov 92   ;;  %vm586_vm5 = vcmask 883712   ;;  %v992_v19 = vld [vmem:[%s1410_s1 + $0x4] sm:$0xf] }
  0x22   : > { %v309_v6 = vunpack.c.0.s8 %v308_v3  ;;  %s1215_s28 = smov 126   ;;  %s1216_s30 = smov 91   ;;  %vm321_vm6 = vcmask 31744   ;;  %v999_v20 = vld [vmem:[%s1410_s1 + $0x10] sm:$0xf]  ;;  %v373_v23 = vsel %vm325_vm4, %v302_v7, 0 }
  0x23   : > { %s1217_s7 = smov 110   ;;  %s1218_s8 = smov 90   ;;  %vm641_vm7 = vcmask 752640   ;;  %vm421_vm8 = vcmask 1031168   ;;  %v303_v32 = vld [vmem:[%s1410_s1] sm:$0xf] }
  0x24   : > { %v312_v8 = vsub.s32 %v309_v6, %v311_v4  ;;  %v1001_v33 = vld [vmem:[%s1410_s1 + $0x14] sm:$0xf]  ;;  %vm696_vm9 = vcmask 744448   ;;  %vm476_vm10 = vcmask 900096   ;;  %v995_v42 = vld [vmem:[%s1410_s1 + $0x8] sm:$0xf] }
  0x25   : > { %v1003_v43 = vld [vmem:[%s1410_s1 + $0x18] sm:$0xf]  ;;  %vm751_vm11 = vcmask 736256   ;;  %v997_v49 = vld [vmem:[%s1410_s1 + $0xc] sm:$0xf]  ;;  %v809_v1 = vld [vmem:[%s1293_s12] sm:$0xff] }
  0x26   : > { %v313_v9 = vrot.slane %v302_v7, %v312_v8  ;;  %v1005_v50 = vld [vmem:[%s1410_s1 + $0x1c] sm:$0xf]  ;;  %v1007_v52 = vld [vmem:[%s1410_s1 + $0x20] sm:$0xf]  ;;  %vm813_vm12 = vcmask 7168  }
  0x27   : > { %v1009_v58 = vld [vmem:[%s277_s6] ss:$0 sm:$0xff] }
  0x28   : > { %315 = vrot.lane.b32.xlu1 %v313_v9, %s1211_s18  ;;  %527 = vrot.lane.b32.xlu0 %v313_v9, %s1212_s23  ;;  %v314_v10 = vcombine.high %v313_v9, %v313_v9  ;;  %v815_v3 = vld [vmem:[%s1302_s21] sm:$0xff] }
  0x2c   : > { %317 = vrot.lane.b32.xlu1 %v314_v10, %s1211_s18  ;;  %529 = vrot.lane.b32.xlu0 %v314_v10, %s1212_s23 }
  0x30   : > { %584 = vrot.lane.b32.xlu1 %v314_v10, %s1213_s24  ;;  %582 = vrot.lane.b32.xlu0 %v313_v9, %s1213_s24 }
  0x34   : > { %639 = vrot.lane.b32.xlu1 %v314_v10, %s1214_s27  ;;  %637 = vrot.lane.b32.xlu0 %v313_v9, %s1214_s27 }
  0x38   : > { %419 = vrot.lane.b32.xlu1 %v314_v10, %s1215_s28  ;;  %417 = vrot.lane.b32.xlu0 %v313_v9, %s1215_s28 }
  0x3c   : > { %694 = vrot.lane.b32.xlu1 %v314_v10, %s1216_s30  ;;  %692 = vrot.lane.b32.xlu0 %v313_v9, %s1216_s30 }
  0x40   : > { %474 = vrot.lane.b32.xlu1 %v314_v10, %s1217_s7  ;;  %472 = vrot.lane.b32.xlu0 %v313_v9, %s1217_s7 }
  0x44   : > { %749 = vrot.lane.b32.xlu1 %v314_v10, %s1218_s8  ;;  %747 = vrot.lane.b32.xlu0 %v313_v9, %s1218_s8 }
  0x9a   : > { %v316_v11 = vpop.permute.xlu1 %315  ;;  %v528_v12 = vpop.permute.xlu0 %527 }
  0x9e   : > { %v318_v13 = vpop.permute.xlu1 %317  ;;  %v530_v14 = vpop.permute.xlu0 %529 }
  0x9f   : > { %v320_v15 = vsel %vm319_vm2, %v316_v11, %v318_v13  ;;  %v532_v16 = vsel %vm531_vm3, %v528_v12, %v530_v14 }
  0xa0   : > { %v327_v17 = vsel %vm325_vm4, %v320_v15, 0  ;;  %v537_v18 = vsel %vm325_vm4, %v532_v16, 0 }
  0xa1   : > { %1031 = vmatpush3.bf16.msra.mxu1 %v327_v17  ;;  %1055 = vmatpush3.bf16.msra.mxu0 %v537_v18 }
  0xa2   : > { %v585_v21 = vpop.permute.xlu1 %584  ;;  %v583_v22 = vpop.permute.xlu0 %582  ;;  %1060 = vmatprep.subr.bf16.mxu0 %v1209_v5  ;;  %1036 = vmatprep.subr.bf16.mxu1 %v1209_v5 }
  0xa3   : > { %v587_v24 = vsel %vm586_vm5, %v583_v22, %v585_v21 }
  0xa4   : > { %v592_v25 = vsel %vm325_vm4, %v587_v24, 0  ;;  %1033 = vmatmul.mubr.msk.bf16.vlgmr.msra.gmra.mrb[0].mxu1 %vm321_vm6, %v992_v19  ;;  %1057 = vmatmul.mubr.msk.bf16.vlgmr.msra.gmra.mrb[0].mxu0 %vm321_vm6, %v999_v20 }
  0xa5   : > { %1061 = vmatpush3.bf16.msra.mxu0 %v592_v25  ;;  %1037 = vmatpush3.bf16.msra.mxu1 %v373_v23 }
  0xa6   : > { %v640_v26 = vpop.permute.xlu1 %639  ;;  %v638_v27 = vpop.permute.xlu0 %637  ;;  %1038 = vmatprep.mubr.msk.bf16.mxu1 %vm1210_vm1, %v1209_v5  ;;  %1062 = vmatprep.mubr.msk.bf16.mxu0 %vm1210_vm1, %v1209_v5 }
  0xa7   : > { %1066 = vmatprep.subr.bf16.mxu0 %v1209_v5  ;;  %1042 = vmatprep.subr.bf16.mxu1 %v1209_v5  ;;  %v642_v30 = vsel %vm641_vm7, %v638_v27, %v640_v26 }
  0xa8   : > { %v647_v34 = vsel %vm325_vm4, %v642_v30, 0 }
  0xaa   : > { %v420_v28 = vpop.permute.xlu1 %419  ;;  %v418_v29 = vpop.permute.xlu0 %417 }
  0xab   : > { %v422_v31 = vsel %vm421_vm8, %v418_v29, %v420_v28 }
  0xac   : > { %v427_v35 = vsel %vm325_vm4, %v422_v31, 0 }
  0xae   : > { %v695_v36 = vpop.permute.xlu1 %694  ;;  %v693_v37 = vpop.permute.xlu0 %692 }
  0xaf   : > { %v697_v40 = vsel %vm696_vm9, %v693_v37, %v695_v36 }
  0xb0   : > { %1039 = vmatmul.mubr.msk.bf16.vlgmr.msra.gmra.mrb[0].mxu1 %vm321_vm6, %v303_v32  ;;  %1063 = vmatmul.mubr.msk.bf16.vlgmr.msra.gmra.mrb[0].mxu0 %vm321_vm6, %v1001_v33  ;;  %v702_v44 = vsel %vm325_vm4, %v697_v40, 0 }
  0xb1   : > { %1067 = vmatpush3.bf16.msra.mxu0 %v647_v34  ;;  %1043 = vmatpush3.bf16.msra.mxu1 %v427_v35 }
  0xb2   : > { %1044 = vmatprep.mubr.msk.bf16.mxu1 %vm1210_vm1, %v1209_v5  ;;  %1068 = vmatprep.mubr.msk.bf16.mxu0 %vm1210_vm1, %v1209_v5  ;;  %v475_v38 = vpop.permute.xlu1 %474  ;;  %v473_v39 = vpop.permute.xlu0 %472 }
  0xb3   : > { %1072 = vmatprep.subr.bf16.mxu0 %v1209_v5  ;;  %1048 = vmatprep.subr.bf16.mxu1 %v1209_v5  ;;  %v477_v41 = vsel %vm476_vm10, %v473_v39, %v475_v38 }
  0xb4   : > { %v482_v45 = vsel %vm325_vm4, %v477_v41, 0 }
  0xb6   : > { %v750_v46 = vpop.permute.xlu1 %749  ;;  %v748_v47 = vpop.permute.xlu0 %747 }
  0xb7   : > { %v752_v48 = vsel %vm751_vm11, %v748_v47, %v750_v46 }
  0xb8   : > { %v757_v51 = vsel %vm325_vm4, %v752_v48, 0 }
  0xbc   : > { %1045 = vmatmul.mubr.msk.bf16.vlgmr.msra.gmra.mrb[0].mxu1 %vm321_vm6, %v995_v42  ;;  %1069 = vmatmul.mubr.msk.bf16.vlgmr.msra.gmra.mrb[0].mxu0 %vm321_vm6, %v1003_v43 }
  0xbd   : > { %1073 = vmatpush3.bf16.msra.mxu0 %v702_v44  ;;  %1049 = vmatpush3.bf16.msra.mxu1 %v482_v45 }
  0xbe   : > { %1050 = vmatprep.mubr.msk.bf16.mxu1 %vm1210_vm1, %v1209_v5  ;;  %1074 = vmatprep.mubr.msk.bf16.mxu0 %vm1210_vm1, %v1209_v5 }
  0xbf   : > { %1078 = vmatprep.subr.bf16.mxu0 %v1209_v5 }
  0xc8   : > { %1051 = vmatmul.mubr.msk.bf16.vlgmr.msra.gmra.mrb[0].mxu1 %vm321_vm6, %v997_v49  ;;  %1075 = vmatmul.mubr.msk.bf16.vlgmr.msra.gmra.mrb[0].mxu0 %vm321_vm6, %v1005_v50 }
  0xc9   : > { %1079 = vmatpush3.bf16.msra.mxu0 %v757_v51  ;;  %1080 = vmatprep.mubr.msk.bf16.mxu0 %vm1210_vm1, %v1209_v5 }
  0xd4   : > { %1081 = vmatmul.mubr.msk.bf16.vlgmr.msra.gmra.mrb[0].mxu0 %vm321_vm6, %v1007_v52 }
 0x19b   : > { %v518_v53 = vpop.f32.mrb[0].mxu1 }
 0x19c   : > { %v1052_v54 = vpop.f32.mrb[1].mxu1 }
 0x19d   : > { %v521_v55 = vpop.f32.mrb[2].mxu1 }
 0x19e   : > { %v1053_v56 = vpop.f32.mrb[3].mxu1 }
 0x1a7   : > { %v793_v57 = vpop.f32.mrb[0].mxu0 }
 0x1a8   : > { %v1084_v59 = vadd.f32 %v793_v57, %v518_v53  ;;  %v1082_v60 = vpop.f32.mrb[1].mxu0 }
 0x1a9   : > { %v796_v61 = vpop.f32.mrb[2].mxu0 }
 0x1aa   : > { %800 = vst [vmem:[%s1307_s19] sm:$0xff] %v1084_v59  ;;  %v1083_v62 = vpop.f32.mrb[3].mxu0  ;;  %v808_v63 = vmul.f32 %v1084_v59, %v1009_v58 }
 0x1ac   : > { %810 = vadd.xlane.f32.xlu0 %v808_v63  ;;  %v816_v0 = vmul.f32 %v1084_v59, %v808_v63 }
 0x1ae   : > { %817 = vadd.xlane.f32.xlu1 %v816_v0 }
 0x239   : > { %v811_v2 = vpop.xlane.xlu0 %810 }
 0x23a   : > { %v812_v4 = vadd.f32 %v811_v2, %v809_v1 }
 0x23b   : > { %v818_v5 = vpop.xlane.xlu1 %817 }
 0x23c   : > { %814 = vst.msk [vmem:[%s1293_s12] sm:$0xff] %vm813_vm12, %v812_v4  ;;  %v819_v6 = vadd.f32 %v818_v5, %v815_v3 }
 0x23e   : > { %820 = vst.msk [vmem:[%s1302_s21] sm:$0xff] %vm813_vm12, %v819_v6 }
 0x23f PF: > { %s16_s22 = sadd.s32 1, %s1205_s22   ;;  %s1419_s19 = sld [smem:[#allocation2_spill]] }
 0x240   : > { %p13_p8 = scmp.ge.s32.totalorder %s16_s22, 8   ;;  %s1420_s25 = sld [smem:[#allocation3_spill]] }
 0x241   : > { %s1421_s21 = sld [smem:[#allocation4_spill]]  ;;  %s1422_s18 = smov %s1197_s20 }
 0x242   :  { %15 = sbr.rel (!%p13_p8) target bundleno = 3 (0x3), region = 101 }
 0x246   : > { %s1423_s20 = smov %s1420_s25 }

</bundles_post_ra>
